<compile_context>
chip_gen: v7x
topology: tpu7x:2x2x1
jax: 0.10.0
libtpu: 0.0.40
codegen_flags: <defaults>
</compile_context>

<pallas_src>
import functools

import jax
import jax.numpy as jnp
from jax.experimental import pallas as pl
from jax.experimental.pallas import tpu as pltpu

NEG_BIG = -9e16


def _leaky(x, slope):
    return jnp.where(x >= 0, x, slope * x)


def fusion_graph_kernel(flags_ref, rowv_ref, ce_ref, ne_ref, adj_ref,
                        fold_ref, dw_ref, db_ref, out_ref, p_ref, *, dot_dtype):
    n = adj_ref.shape[0]
    f32 = jnp.float32

    def mxdot(a, b):
        return jnp.dot(a.astype(dot_dtype), b.astype(dot_dtype),
                       preferred_element_type=f32)

    rowv = rowv_ref[...]                 # (2N, 2): col0 = [code_x; neighbor], col1 = [w_c; w_n]
    sel2 = rowv[:, 0:1]                  # (2N, 1) selection weights
    w2 = rowv[:, 1:2]                    # (2N, 1) fusion weights
    cx = sel2[0:n]                       # (N, 1)
    nb = sel2[n:2 * n]                   # (N, 1)
    adj = adj_ref[...]                   # (N, N), dot_dtype

    # ---------------- GraphLayer.get_embedding (GCN path) ----------------
    # adj@center_e + adj@neighbor_e == adj@(center_e + neighbor_e): one matmul.
    center_e = cx * ce_ref[...]
    neighbor_e = nb * ne_ref[...]
    agg = mxdot(adj, center_e + neighbor_e)            # (N, C), f32 accumulate
    gcn_c = center_e + cx * agg
    gcn_n = neighbor_e + nb * agg
    g2 = jnp.concatenate([gcn_c, gcn_n], axis=0)       # (2N, C) stacked [center; neighbor]

    # ----- folded GAT projections: ONE (2N,C)@(C,4) matmul, kept in f32 for softmax -----
    # fold cols: 0 = Wc^T a_sc, 1 = Wc^T a_tc, 2 = Wn^T a_sn, 3 = Wn^T a_tn
    proj = jnp.dot(g2, fold_ref[...], preferred_element_type=f32)   # (2N, 4)
    src_c = proj[0:n, 0:1]             # c_attn source scores of gcn_c   (N, 1)
    src_n = proj[n:2 * n, 2:3]         # n_attn source scores of gcn_n   (N, 1)
    tgt_cc = proj[0:n, 1:2].T          # c_attn target scores, targets = gcn_c  (1, N)
    tgt_nn = proj[n:2 * n, 3:4].T      # n_attn target scores, targets = gcn_n  (1, N)

    # One nested-select two-tier bias per target set, shared by both blocks using it.
    c_row = cx.T > 0                                   # (1, N)
    n_row = nb.T > 0                                   # (1, N)
    adj_pos = adj > 0
    bias_tc = jnp.where(adj_pos & c_row, 0.0,
                        jnp.where(c_row, NEG_BIG, 2.0 * NEG_BIG))   # targets = center set
    bias_tn = jnp.where(adj_pos & n_row, 0.0,
                        jnp.where(n_row, NEG_BIG, 2.0 * NEG_BIG))   # targets = neighbor set

    def probs(src_col, tgt_row, bias):
        s = _leaky(src_col + tgt_row, 0.2) + bias
        m = jnp.max(s, axis=-1, keepdims=True)
        e = jnp.exp(s - m)
        inv = pl.reciprocal(jnp.sum(e, axis=-1, keepdims=True), approx=False)
        return (e * inv).astype(p_ref.dtype)

    # Block-quadrant probability matrix P (2N,2N); contrib = P @ g2 in ONE matmul (K=2N).
    p_ref[0:n, 0:n] = probs(src_c, tgt_cc, bias_tc)            # cc
    p_ref[n:2 * n, n:2 * n] = probs(src_n, tgt_nn, bias_tn)    # nn

    both = jnp.logical_and(flags_ref[0] > 0, flags_ref[1] > 0)

    # cross attention only when BOTH node sets are non-empty (PyTorch if-branches)
    @pl.when(both)
    def _():
        tgt_cn = proj[n:2 * n, 1:2].T    # c_attn target scores, targets = gcn_n
        tgt_nc = proj[0:n, 3:4].T        # n_attn target scores, targets = gcn_c
        p_ref[0:n, n:2 * n] = probs(src_c, tgt_cn, bias_tn)       # cn
        p_ref[n:2 * n, 0:n] = probs(src_n, tgt_nc, bias_tc)       # nc

    @pl.when(jnp.logical_not(both))
    def _():
        # Scratch VMEM persists across invocations -> zero the skipped cross quadrants.
        zero = jnp.zeros((n, n), p_ref.dtype)
        p_ref[0:n, n:2 * n] = zero
        p_ref[n:2 * n, 0:n] = zero

    contrib = mxdot(p_ref[...], g2)                    # (2N, C): [cc+cn ; nc+nn]

    # ---------------- FusionGraphLayer tail (fused) ----------------
    #   gat = gcn + mask*contrib ; final = gcn*(1-w) + gat*w = gcn + w*mask*contrib
    mask2 = (sel2 > 0).astype(f32)                     # (2N, 1)
    final = g2 + w2 * (mask2 * contrib)                # (2N, C)

    out_ref[...] = _leaky(mxdot(final, dw_ref[...]) + db_ref[...], 0.01)  # (2N, G_pad)


def fusion_graph_layer(code_x, neighbor, c_embeddings, n_embeddings, adj, params,
                       *, mxu_dtype=jnp.bfloat16):
    """Wrapper: fold/transpose/pad params to kernel layout and run one fused kernel.

    mxu_dtype controls the inputs of the three big matmuls (adj aggregation, P@g2
    aggregation, dense head) and the probability scratch / adj / dense-W buffers.
    Softmax / bias / elementwise math and the score projection are always f32.
    """
    n, c = c_embeddings.shape
    g = params["dense_w"].shape[0]
    f32 = jnp.float32
    g_pad = ((g + 127) // 128) * 128          # lane-dense output stores

    # Tiny per-row inputs in ONE (2N,2) array: col0 = [code_x;neighbor], col1 = [w_c;w_n]
    sel2 = jnp.concatenate([code_x.reshape(n, 1), neighbor.reshape(n, 1)], axis=0).astype(f32)
    w2 = jnp.concatenate([params["w_c"], params["w_n"]], axis=0).astype(f32)
    rowv = jnp.concatenate([sel2, w2], axis=1)                       # (2N, 2)

    # Fold a_s / a_t into W:  a_s(W(x)) == x @ (a_s @ W)^T  ->  four (C, 1) columns.
    fold = jnp.concatenate([
        (params["c_a_s"] @ params["c_W"]).T,   # col 0: c_attn source
        (params["c_a_t"] @ params["c_W"]).T,   # col 1: c_attn target
        (params["n_a_s"] @ params["n_W"]).T,   # col 2: n_attn source
        (params["n_a_t"] @ params["n_W"]).T,   # col 3: n_attn target
    ], axis=1).astype(f32)                                           # (C, 4)

    dw = jnp.pad(params["dense_w"].T.astype(mxu_dtype), ((0, 0), (0, g_pad - g)))  # (C, G_pad)
    db = jnp.pad(params["dense_b"].reshape(1, g).astype(f32), ((0, 0), (0, g_pad - g)))
    flags = jnp.stack([jnp.any(code_x > 0), jnp.any(neighbor > 0)]).astype(jnp.int32)

    vmem = pl.BlockSpec(memory_space=pltpu.MemorySpace.VMEM)
    smem = pl.BlockSpec(memory_space=pltpu.MemorySpace.SMEM)

    # Probability scratch in the MXU dtype (halves the largest buffer on v7x's 64 MiB
    # VMEM); fall back to f32 when the quadrant boundary is not sublane-tile aligned.
    p_dtype = mxu_dtype if (n % 8 == 0) else f32

    itemsize = jnp.dtype(mxu_dtype).itemsize
    flops = (2 * n * n * c                       # GCN adj matmul
             + 2 * (2 * n) * c * 4               # folded score projection (f32)
             + 2 * (2 * n) * (2 * n) * c         # single P@g2 aggregation
             + 2 * (2 * n) * c * g_pad)          # dense head
    bytes_accessed = (4 * (2 * n * 2 + 2 * n * c + c * 4 + g_pad + 2 * n * g_pad)
                      + itemsize * (n * n + c * g_pad) + 8)

    out = pl.pallas_call(
        functools.partial(fusion_graph_kernel, dot_dtype=mxu_dtype),
        out_shape=jax.ShapeDtypeStruct((2 * n, g_pad), f32),
        in_specs=[smem] + [vmem] * 7,
        out_specs=vmem,
        scratch_shapes=[pltpu.VMEM((2 * n, 2 * n), p_dtype)],   # block-quadrant probs
        # 48 MiB is safe on v7x (64 MiB physical) and leaves headroom on v5e/v6e.
        compiler_params=pltpu.CompilerParams(vmem_limit_bytes=48 * 1024 * 1024),
        cost_estimate=pl.CostEstimate(flops=int(flops),
                                      transcendentals=int(4 * n * n + 4 * n),
                                      bytes_accessed=int(bytes_accessed)),
    )(flags, rowv,
      c_embeddings.astype(f32), n_embeddings.astype(f32), adj.astype(mxu_dtype),
      fold, dw, db)
    return out[:n, :g], out[n:, :g]


def fusion_graph_layer_ref(code_x, neighbor, c_embeddings, n_embeddings, adj, params):
    """Pure-JAX reference implementing the same (PyTorch-equivalent) math."""
    cx = code_x.reshape(-1, 1)
    nb = neighbor.reshape(-1, 1)
    center_e = cx * c_embeddings
    neighbor_e = nb * n_embeddings
    adj_ce = adj @ center_e
    adj_ne = adj @ neighbor_e
    gcn_c = center_e + cx * adj_ce + cx * adj_ne
    gcn_n = neighbor_e + nb * adj_ne + nb * adj_ce

    cmask = (cx > 0).astype(jnp.float32)
    nmask = (nb > 0).astype(jnp.float32)
    conn = (adj > 0).astype(jnp.float32)

    def gat_conv(W, a_s, a_t, x_s, x_t, smask, tmask):
        hs = x_s @ W.T
        ht = x_t @ W.T
        src = hs @ a_s.T
        tgt = ht @ a_t.T
        scores = _leaky(src + tgt.T, 0.2)
        mask = smask * conn * tmask.T
        bias = (jnp.where(mask > 0, 0.0, NEG_BIG)
                + jnp.where(tmask.T > 0, 0.0, NEG_BIG))
        scores = scores + bias
        m = jnp.max(scores, axis=-1, keepdims=True)
        e = jnp.exp(scores - m)
        p = e / jnp.sum(e, axis=-1, keepdims=True)
        return p @ x_t

    cc = gat_conv(params["c_W"], params["c_a_s"], params["c_a_t"], gcn_c, gcn_c, cmask, cmask)
    nn_ = gat_conv(params["n_W"], params["n_a_s"], params["n_a_t"], gcn_n, gcn_n, nmask, nmask)
    cn = gat_conv(params["c_W"], params["c_a_s"], params["c_a_t"], gcn_c, gcn_n, cmask, nmask)
    nc = gat_conv(params["n_W"], params["n_a_s"], params["n_a_t"], gcn_n, gcn_c, nmask, cmask)

    has_c = (jnp.max(cmask) > 0).astype(jnp.float32)
    has_n = (jnp.max(nmask) > 0).astype(jnp.float32)
    gat_c = gcn_c + cmask * (cc + has_n * cn)
    gat_n = gcn_n + nmask * (nn_ + has_c * nc)

    c_final = gcn_c * (1.0 - params["w_c"]) + gat_c * params["w_c"]
    n_final = gcn_n * (1.0 - params["w_n"]) + gat_n * params["w_n"]
    co = _leaky(c_final @ params["dense_w"].T + params["dense_b"], 0.01)
    no = _leaky(n_final @ params["dense_w"].T + params["dense_b"], 0.01)
    return co, no


if __name__ == "__main__":
    # Small deterministic problem: code_num=16, code_size=32, graph_size=32, attention=64.
    N, C, G, A = 16, 32, 32, 64
    key = jax.random.PRNGKey(0)
    keys = jax.random.split(key, 12)

    u_c = jax.random.uniform(keys[0], (N,))
    u_n = jax.random.uniform(keys[1], (N,))
    code_x = jnp.where(u_c > 0.4, u_c, 0.0)        # some selected, some not
    neighbor = jnp.where(u_n > 0.4, u_n, 0.0)
    c_embeddings = jax.random.normal(keys[2], (N, C), jnp.float32)
    n_embeddings = jax.random.normal(keys[3], (N, C), jnp.float32)
    adj = (jax.random.uniform(keys[4], (N, N)) > 0.5).astype(jnp.float32)

    scale = 0.1
    params = {
        "c_W":   scale * jax.random.normal(keys[5], (A, C), jnp.float32),   # c_attn.W.weight
        "c_a_s": scale * jax.random.normal(keys[6], (1, A), jnp.float32),   # c_attn.a_s.weight
        "c_a_t": scale * jax.random.normal(keys[7], (1, A), jnp.float32),   # c_attn.a_t.weight
        "n_W":   scale * jax.random.normal(keys[8], (A, C), jnp.float32),   # n_attn.W.weight
        "n_a_s": scale * jax.random.normal(keys[9], (1, A), jnp.float32),   # n_attn.a_s.weight
        "n_a_t": scale * jax.random.normal(keys[10], (1, A), jnp.float32),  # n_attn.a_t.weight
        "dense_w": scale * jax.random.normal(keys[11], (G, C), jnp.float32),
        "dense_b": jnp.linspace(-0.1, 0.1, G).astype(jnp.float32),
        # NOTE: PyTorch initializes w_c/w_n to zeros (which zeroes the GAT branch);
        # use deterministic nonzero values here so both fused branches are exercised.
        "w_c": jnp.linspace(0.0, 1.0, N, dtype=jnp.float32).reshape(N, 1),
        "w_n": jnp.linspace(1.0, 0.0, N, dtype=jnp.float32).reshape(N, 1),
    }

    zero_nb = jnp.zeros_like(neighbor)
    co_ref, no_ref = fusion_graph_layer_ref(code_x, neighbor, c_embeddings, n_embeddings, adj, params)
    co0_ref, no0_ref = fusion_graph_layer_ref(code_x, zero_nb, c_embeddings, n_embeddings, adj, params)

    # --- exact-math path (mxu_dtype=f32), both node sets non-empty ---
    co, no = fusion_graph_layer(code_x, neighbor, c_embeddings, n_embeddings, adj, params,
                                mxu_dtype=jnp.float32)
    co, no = jax.block_until_ready(co), jax.block_until_ready(no)
    assert co.shape == (N, G) and no.shape == (N, G)
    assert jnp.allclose(co, co_ref, atol=1e-4, rtol=1e-4)
    assert jnp.allclose(no, no_ref, atol=1e-4, rtol=1e-4)

    # --- exact-math path, neighbor set empty: cross quadrants must be re-zeroed
    #     (scratch persists across calls; previous call populated them) ---
    co0, no0 = fusion_graph_layer(code_x, zero_nb, c_embeddings, n_embeddings, adj, params,
                                  mxu_dtype=jnp.float32)
    co0, no0 = jax.block_until_ready(co0), jax.block_until_ready(no0)
    assert jnp.allclose(co0, co0_ref, atol=1e-4, rtol=1e-4)
    assert jnp.allclose(no0, no0_ref, atol=1e-4, rtol=1e-4)

    # --- default bf16-MXU path (recommended on v5e/v6e/v7x): reduced precision check ---
    co_bf, no_bf = fusion_graph_layer(code_x, neighbor, c_embeddings, n_embeddings, adj, params)
    co_bf, no_bf = jax.block_until_ready(co_bf), jax.block_until_ready(no_bf)
    assert bool(jnp.all(jnp.isfinite(co_bf))) and bool(jnp.all(jnp.isfinite(no_bf)))
    assert float(jnp.max(jnp.abs(co_bf - co_ref))) < 0.5
    assert float(jnp.max(jnp.abs(no_bf - no_ref))) < 0.5

    # --- default bf16-MXU path, neighbor set empty (pl.when skip branch) ---
    co0_bf, no0_bf = fusion_graph_layer(code_x, zero_nb, c_embeddings, n_embeddings, adj, params)
    co0_bf, no0_bf = jax.block_until_ready(co0_bf), jax.block_until_ready(no0_bf)
    assert bool(jnp.all(jnp.isfinite(co0_bf))) and bool(jnp.all(jnp.isfinite(no0_bf)))
    assert float(jnp.max(jnp.abs(co0_bf - co0_ref))) < 0.5
    assert float(jnp.max(jnp.abs(no0_bf - no0_ref))) < 0.5

    print("KERNEL_OK")
</pallas_src>

<mosaic_0001>
module attributes {stable_mosaic.version = 11 : i64} {
  func.func @fusion_graph_kernel(%arg0: memref<2xi32, #tpu.memory_space<smem>>, %arg1: memref<32x2xf32, #tpu.memory_space<vmem>>, %arg2: memref<16x32xf32, #tpu.memory_space<vmem>>, %arg3: memref<16x32xf32, #tpu.memory_space<vmem>>, %arg4: memref<16x16xf32, #tpu.memory_space<vmem>>, %arg5: memref<32x4xf32, #tpu.memory_space<vmem>>, %arg6: memref<32x128xf32, #tpu.memory_space<vmem>>, %arg7: memref<1x128xf32, #tpu.memory_space<vmem>>, %arg8: memref<32x128xf32, #tpu.memory_space<vmem>>, %arg9: memref<32x32xf32, #tpu.memory_space<vmem>>) attributes {dimension_semantics = [], scalar_prefetch = 0 : i64, scratch_operands = 1 : i64, tpu.core_type = #tpu.core_type<tc>} {
    %c0 = arith.constant 0 : index
    %c0_0 = arith.constant 0 : index
    %0 = vector.load %arg1[%c0, %c0_0] : memref<32x2xf32, #tpu.memory_space<vmem>>, vector<32x2xf32>
    %1 = vector.extract_strided_slice %0 {offsets = [0, 0], sizes = [32, 1], strides = [1, 1]} : vector<32x2xf32> to vector<32x1xf32>
    %2 = vector.extract_strided_slice %0 {offsets = [0, 1], sizes = [32, 1], strides = [1, 1]} : vector<32x2xf32> to vector<32x1xf32>
    %3 = vector.extract_strided_slice %1 {offsets = [0, 0], sizes = [16, 1], strides = [1, 1]} : vector<32x1xf32> to vector<16x1xf32>
    %4 = vector.extract_strided_slice %1 {offsets = [16, 0], sizes = [16, 1], strides = [1, 1]} : vector<32x1xf32> to vector<16x1xf32>
    %c0_1 = arith.constant 0 : index
    %c0_2 = arith.constant 0 : index
    %5 = vector.load %arg4[%c0_1, %c0_2] : memref<16x16xf32, #tpu.memory_space<vmem>>, vector<16x16xf32>
    %c0_3 = arith.constant 0 : index
    %c0_4 = arith.constant 0 : index
    %6 = vector.load %arg2[%c0_3, %c0_4] : memref<16x32xf32, #tpu.memory_space<vmem>>, vector<16x32xf32>
    %7 = vector.broadcast %3 : vector<16x1xf32> to vector<16x32xf32>
    %8 = arith.mulf %7, %6 : vector<16x32xf32>
    %c0_5 = arith.constant 0 : index
    %c0_6 = arith.constant 0 : index
    %9 = vector.load %arg3[%c0_5, %c0_6] : memref<16x32xf32, #tpu.memory_space<vmem>>, vector<16x32xf32>
    %10 = vector.broadcast %4 : vector<16x1xf32> to vector<16x32xf32>
    %11 = arith.mulf %10, %9 : vector<16x32xf32>
    %12 = arith.addf %8, %11 : vector<16x32xf32>
    %cst = arith.constant dense<0.000000e+00> : vector<16x32xf32>
    %13 = tpu.matmul %5, %12, %cst {dimension_numbers = #tpu.dot_dimension_numbers<[1], [0], [0], [1], [0, 0, 1, 1], [], []>} : vector<16x16xf32>, vector<16x32xf32>, vector<16x32xf32> -> vector<16x32xf32>
    %14 = vector.broadcast %3 : vector<16x1xf32> to vector<16x32xf32>
    %15 = arith.mulf %14, %13 : vector<16x32xf32>
    %16 = arith.addf %8, %15 : vector<16x32xf32>
    %17 = vector.broadcast %4 : vector<16x1xf32> to vector<16x32xf32>
    %18 = arith.mulf %17, %13 : vector<16x32xf32>
    %19 = arith.addf %11, %18 : vector<16x32xf32>
    %20 = tpu.concatenate %16, %19 in 0 : vector<16x32xf32>, vector<16x32xf32> -> vector<32x32xf32>
    %c0_7 = arith.constant 0 : index
    %c0_8 = arith.constant 0 : index
    %21 = vector.load %arg5[%c0_7, %c0_8] : memref<32x4xf32, #tpu.memory_space<vmem>>, vector<32x4xf32>
    %cst_9 = arith.constant dense<0.000000e+00> : vector<32x4xf32>
    %22 = tpu.matmul %20, %21, %cst_9 {dimension_numbers = #tpu.dot_dimension_numbers<[1], [0], [0], [1], [0, 0, 1, 1], [], []>} : vector<32x32xf32>, vector<32x4xf32>, vector<32x4xf32> -> vector<32x4xf32>
    %23 = vector.extract_strided_slice %22 {offsets = [0, 0], sizes = [16, 1], strides = [1, 1]} : vector<32x4xf32> to vector<16x1xf32>
    %24 = vector.extract_strided_slice %22 {offsets = [16, 2], sizes = [16, 1], strides = [1, 1]} : vector<32x4xf32> to vector<16x1xf32>
    %25 = vector.extract_strided_slice %22 {offsets = [0, 1], sizes = [16, 1], strides = [1, 1]} : vector<32x4xf32> to vector<16x1xf32>
    %26 = tpu.transpose %25, [1, 0] : vector<16x1xf32> -> vector<1x16xf32>
    %27 = vector.extract_strided_slice %22 {offsets = [16, 3], sizes = [16, 1], strides = [1, 1]} : vector<32x4xf32> to vector<16x1xf32>
    %28 = tpu.transpose %27, [1, 0] : vector<16x1xf32> -> vector<1x16xf32>
    %29 = tpu.transpose %3, [1, 0] : vector<16x1xf32> -> vector<1x16xf32>
    %cst_10 = arith.constant 0.000000e+00 : f32
    %30 = vector.broadcast %cst_10 : f32 to vector<1x16xf32>
    %31 = arith.cmpf ogt, %29, %30 : vector<1x16xf32>
    %32 = tpu.transpose %4, [1, 0] : vector<16x1xf32> -> vector<1x16xf32>
    %cst_11 = arith.constant 0.000000e+00 : f32
    %33 = vector.broadcast %cst_11 : f32 to vector<1x16xf32>
    %34 = arith.cmpf ogt, %32, %33 : vector<1x16xf32>
    %cst_12 = arith.constant 0.000000e+00 : f32
    %35 = vector.broadcast %cst_12 : f32 to vector<16x16xf32>
    %36 = arith.cmpf ogt, %5, %35 : vector<16x16xf32>
    %37 = vector.broadcast %31 : vector<1x16xi1> to vector<16x16xi1>
    %38 = arith.andi %36, %37 : vector<16x16xi1>
    %cst_13 = arith.constant -9.000000e+16 : f32
    %cst_14 = arith.constant -1.800000e+17 : f32
    %39 = vector.broadcast %cst_13 : f32 to vector<1x16xf32>
    %40 = vector.broadcast %cst_14 : f32 to vector<1x16xf32>
    %41 = arith.select %31, %39, %40 : vector<1x16xi1>, vector<1x16xf32>
    %cst_15 = arith.constant 0.000000e+00 : f32
    %42 = vector.broadcast %cst_15 : f32 to vector<16x16xf32>
    %43 = vector.shape_cast %41 : vector<1x16xf32> to vector<1x16xf32>
    %44 = vector.broadcast %43 : vector<1x16xf32> to vector<16x16xf32>
    %45 = arith.select %38, %42, %44 : vector<16x16xi1>, vector<16x16xf32>
    %46 = vector.broadcast %34 : vector<1x16xi1> to vector<16x16xi1>
    %47 = arith.andi %36, %46 : vector<16x16xi1>
    %cst_16 = arith.constant -9.000000e+16 : f32
    %cst_17 = arith.constant -1.800000e+17 : f32
    %48 = vector.broadcast %cst_16 : f32 to vector<1x16xf32>
    %49 = vector.broadcast %cst_17 : f32 to vector<1x16xf32>
    %50 = arith.select %34, %48, %49 : vector<1x16xi1>, vector<1x16xf32>
    %cst_18 = arith.constant 0.000000e+00 : f32
    %51 = vector.broadcast %cst_18 : f32 to vector<16x16xf32>
    %52 = vector.shape_cast %50 : vector<1x16xf32> to vector<1x16xf32>
    %53 = vector.broadcast %52 : vector<1x16xf32> to vector<16x16xf32>
    %54 = arith.select %47, %51, %53 : vector<16x16xi1>, vector<16x16xf32>
    %55 = vector.broadcast %23 : vector<16x1xf32> to vector<16x16xf32>
    %56 = vector.broadcast %26 : vector<1x16xf32> to vector<16x16xf32>
    %57 = arith.addf %55, %56 : vector<16x16xf32>
    %cst_19 = arith.constant 0.000000e+00 : f32
    %58 = vector.broadcast %cst_19 : f32 to vector<16x16xf32>
    %59 = arith.cmpf oge, %57, %58 : vector<16x16xf32>
    %cst_20 = arith.constant 2.000000e-01 : f32
    %60 = vector.broadcast %cst_20 : f32 to vector<16x16xf32>
    %61 = arith.mulf %60, %57 : vector<16x16xf32>
    %62 = arith.select %59, %57, %61 : vector<16x16xi1>, vector<16x16xf32>
    %63 = arith.addf %62, %45 : vector<16x16xf32>
    %cst_21 = arith.constant dense<0xFF800000> : vector<16xf32>
    %64 = vector.multi_reduction <maximumf>, %63, %cst_21 [1] : vector<16x16xf32> to vector<16xf32>
    %65 = vector.shape_cast %64 : vector<16xf32> to vector<16x1xf32>
    %66 = vector.broadcast %65 : vector<16x1xf32> to vector<16x16xf32>
    %67 = arith.subf %63, %66 : vector<16x16xf32>
    %68 = math.exp %67 : vector<16x16xf32>
    %cst_22 = arith.constant dense<0.000000e+00> : vector<16xf32>
    %69 = vector.multi_reduction <add>, %68, %cst_22 [1] : vector<16x16xf32> to vector<16xf32>
    %70 = vector.shape_cast %69 : vector<16xf32> to vector<16x1xf32>
    %71 = tpu.reciprocal %70 : vector<16x1xf32> -> vector<16x1xf32>
    %72 = vector.broadcast %71 : vector<16x1xf32> to vector<16x16xf32>
    %73 = arith.mulf %68, %72 : vector<16x16xf32>
    %c0_23 = arith.constant 0 : index
    %c0_24 = arith.constant 0 : index
    %74 = vector.load %arg9[%c0_23, %c0_24] : memref<32x32xf32, #tpu.memory_space<vmem>>, vector<16x16xf32>
    tpu.vector_store %arg9[%c0_23, %c0_24], %73 {strides = array<i32>} : memref<32x32xf32, #tpu.memory_space<vmem>>, vector<16x16xf32>,
    %75 = vector.broadcast %24 : vector<16x1xf32> to vector<16x16xf32>
    %76 = vector.broadcast %28 : vector<1x16xf32> to vector<16x16xf32>
    %77 = arith.addf %75, %76 : vector<16x16xf32>
    %cst_25 = arith.constant 0.000000e+00 : f32
    %78 = vector.broadcast %cst_25 : f32 to vector<16x16xf32>
    %79 = arith.cmpf oge, %77, %78 : vector<16x16xf32>
    %cst_26 = arith.constant 2.000000e-01 : f32
    %80 = vector.broadcast %cst_26 : f32 to vector<16x16xf32>
    %81 = arith.mulf %80, %77 : vector<16x16xf32>
    %82 = arith.select %79, %77, %81 : vector<16x16xi1>, vector<16x16xf32>
    %83 = arith.addf %82, %54 : vector<16x16xf32>
    %cst_27 = arith.constant dense<0xFF800000> : vector<16xf32>
    %84 = vector.multi_reduction <maximumf>, %83, %cst_27 [1] : vector<16x16xf32> to vector<16xf32>
    %85 = vector.shape_cast %84 : vector<16xf32> to vector<16x1xf32>
    %86 = vector.broadcast %85 : vector<16x1xf32> to vector<16x16xf32>
    %87 = arith.subf %83, %86 : vector<16x16xf32>
    %88 = math.exp %87 : vector<16x16xf32>
    %cst_28 = arith.constant dense<0.000000e+00> : vector<16xf32>
    %89 = vector.multi_reduction <add>, %88, %cst_28 [1] : vector<16x16xf32> to vector<16xf32>
    %90 = vector.shape_cast %89 : vector<16xf32> to vector<16x1xf32>
    %91 = tpu.reciprocal %90 : vector<16x1xf32> -> vector<16x1xf32>
    %92 = vector.broadcast %91 : vector<16x1xf32> to vector<16x16xf32>
    %93 = arith.mulf %88, %92 : vector<16x16xf32>
    %c16 = arith.constant 16 : index
    %c16_29 = arith.constant 16 : index
    %94 = vector.load %arg9[%c16, %c16_29] : memref<32x32xf32, #tpu.memory_space<vmem>>, vector<16x16xf32>
    tpu.vector_store %arg9[%c16, %c16_29], %93 {strides = array<i32>} : memref<32x32xf32, #tpu.memory_space<vmem>>, vector<16x16xf32>,
    %c0_30 = arith.constant 0 : index
    %95 = memref.load %arg0[%c0_30] : memref<2xi32, #tpu.memory_space<smem>>
    %c0_i32 = arith.constant 0 : i32
    %96 = arith.cmpi sgt, %95, %c0_i32 : i32
    %c1 = arith.constant 1 : index
    %97 = memref.load %arg0[%c1] : memref<2xi32, #tpu.memory_space<smem>>
    %c0_i32_31 = arith.constant 0 : i32
    %98 = arith.cmpi sgt, %97, %c0_i32_31 : i32
    %99 = arith.andi %96, %98 : i1
    %100 = arith.extui %99 : i1 to i32
    %c0_i32_32 = arith.constant 0 : i32
    %101 = arith.cmpi ne, %100, %c0_i32_32 : i32
    scf.if %101 {
      %127 = vector.extract_strided_slice %22 {offsets = [16, 1], sizes = [16, 1], strides = [1, 1]} : vector<32x4xf32> to vector<16x1xf32>
      %128 = tpu.transpose %127, [1, 0] : vector<16x1xf32> -> vector<1x16xf32>
      %129 = vector.extract_strided_slice %22 {offsets = [0, 3], sizes = [16, 1], strides = [1, 1]} : vector<32x4xf32> to vector<16x1xf32>
      %130 = tpu.transpose %129, [1, 0] : vector<16x1xf32> -> vector<1x16xf32>
      %131 = vector.broadcast %23 : vector<16x1xf32> to vector<16x16xf32>
      %132 = vector.broadcast %128 : vector<1x16xf32> to vector<16x16xf32>
      %133 = arith.addf %131, %132 : vector<16x16xf32>
      %cst_47 = arith.constant 0.000000e+00 : f32
      %134 = vector.broadcast %cst_47 : f32 to vector<16x16xf32>
      %135 = arith.cmpf oge, %133, %134 : vector<16x16xf32>
      %cst_48 = arith.constant 2.000000e-01 : f32
      %136 = vector.broadcast %cst_48 : f32 to vector<16x16xf32>
      %137 = arith.mulf %136, %133 : vector<16x16xf32>
      %138 = arith.select %135, %133, %137 : vector<16x16xi1>, vector<16x16xf32>
      %139 = arith.addf %138, %54 : vector<16x16xf32>
      %cst_49 = arith.constant dense<0xFF800000> : vector<16xf32>
      %140 = vector.multi_reduction <maximumf>, %139, %cst_49 [1] : vector<16x16xf32> to vector<16xf32>
      %141 = vector.shape_cast %140 : vector<16xf32> to vector<16x1xf32>
      %142 = vector.broadcast %141 : vector<16x1xf32> to vector<16x16xf32>
      %143 = arith.subf %139, %142 : vector<16x16xf32>
      %144 = math.exp %143 : vector<16x16xf32>
      %cst_50 = arith.constant dense<0.000000e+00> : vector<16xf32>
      %145 = vector.multi_reduction <add>, %144, %cst_50 [1] : vector<16x16xf32> to vector<16xf32>
      %146 = vector.shape_cast %145 : vector<16xf32> to vector<16x1xf32>
      %147 = tpu.reciprocal %146 : vector<16x1xf32> -> vector<16x1xf32>
      %148 = vector.broadcast %147 : vector<16x1xf32> to vector<16x16xf32>
      %149 = arith.mulf %144, %148 : vector<16x16xf32>
      %c0_51 = arith.constant 0 : index
      %c16_52 = arith.constant 16 : index
      %150 = vector.load %arg9[%c0_51, %c16_52] : memref<32x32xf32, #tpu.memory_space<vmem>>, vector<16x16xf32>
      tpu.vector_store %arg9[%c0_51, %c16_52], %149 {strides = array<i32>} : memref<32x32xf32, #tpu.memory_space<vmem>>, vector<16x16xf32>,
      %151 = vector.broadcast %24 : vector<16x1xf32> to vector<16x16xf32>
      %152 = vector.broadcast %130 : vector<1x16xf32> to vector<16x16xf32>
      %153 = arith.addf %151, %152 : vector<16x16xf32>
      %cst_53 = arith.constant 0.000000e+00 : f32
      %154 = vector.broadcast %cst_53 : f32 to vector<16x16xf32>
      %155 = arith.cmpf oge, %153, %154 : vector<16x16xf32>
      %cst_54 = arith.constant 2.000000e-01 : f32
      %156 = vector.broadcast %cst_54 : f32 to vector<16x16xf32>
      %157 = arith.mulf %156, %153 : vector<16x16xf32>
      %158 = arith.select %155, %153, %157 : vector<16x16xi1>, vector<16x16xf32>
      %159 = arith.addf %158, %45 : vector<16x16xf32>
      %cst_55 = arith.constant dense<0xFF800000> : vector<16xf32>
      %160 = vector.multi_reduction <maximumf>, %159, %cst_55 [1] : vector<16x16xf32> to vector<16xf32>
      %161 = vector.shape_cast %160 : vector<16xf32> to vector<16x1xf32>
      %162 = vector.broadcast %161 : vector<16x1xf32> to vector<16x16xf32>
      %163 = arith.subf %159, %162 : vector<16x16xf32>
      %164 = math.exp %163 : vector<16x16xf32>
      %cst_56 = arith.constant dense<0.000000e+00> : vector<16xf32>
      %165 = vector.multi_reduction <add>, %164, %cst_56 [1] : vector<16x16xf32> to vector<16xf32>
      %166 = vector.shape_cast %165 : vector<16xf32> to vector<16x1xf32>
      %167 = tpu.reciprocal %166 : vector<16x1xf32> -> vector<16x1xf32>
      %168 = vector.broadcast %167 : vector<16x1xf32> to vector<16x16xf32>
      %169 = arith.mulf %164, %168 : vector<16x16xf32>
      %c16_57 = arith.constant 16 : index
      %c0_58 = arith.constant 0 : index
      %170 = vector.load %arg9[%c16_57, %c0_58] : memref<32x32xf32, #tpu.memory_space<vmem>>, vector<16x16xf32>
      tpu.vector_store %arg9[%c16_57, %c0_58], %169 {strides = array<i32>} : memref<32x32xf32, #tpu.memory_space<vmem>>, vector<16x16xf32>,
    } else {
    }
    %true = arith.constant true
    %102 = arith.xori %99, %true : i1
    %103 = arith.extui %102 : i1 to i32
    %c0_i32_33 = arith.constant 0 : i32
    %104 = arith.cmpi ne, %103, %c0_i32_33 : i32
    scf.if %104 {
      %cst_47 = arith.constant 0.000000e+00 : f32
      %127 = vector.broadcast %cst_47 : f32 to vector<16x16xf32>
      %c0_48 = arith.constant 0 : index
      %c16_49 = arith.constant 16 : index
      %128 = vector.load %arg9[%c0_48, %c16_49] : memref<32x32xf32, #tpu.memory_space<vmem>>, vector<16x16xf32>
      tpu.vector_store %arg9[%c0_48, %c16_49], %127 {strides = array<i32>} : memref<32x32xf32, #tpu.memory_space<vmem>>, vector<16x16xf32>,
      %c16_50 = arith.constant 16 : index
      %c0_51 = arith.constant 0 : index
      %129 = vector.load %arg9[%c16_50, %c0_51] : memref<32x32xf32, #tpu.memory_space<vmem>>, vector<16x16xf32>
      tpu.vector_store %arg9[%c16_50, %c0_51], %127 {strides = array<i32>} : memref<32x32xf32, #tpu.memory_space<vmem>>, vector<16x16xf32>,
    } else {
    }
    %c0_34 = arith.constant 0 : index
    %c0_35 = arith.constant 0 : index
    %105 = vector.load %arg9[%c0_34, %c0_35] : memref<32x32xf32, #tpu.memory_space<vmem>>, vector<32x32xf32>
    %cst_36 = arith.constant dense<0.000000e+00> : vector<32x32xf32>
    %106 = tpu.matmul %105, %20, %cst_36 {dimension_numbers = #tpu.dot_dimension_numbers<[1], [0], [0], [1], [0, 0, 1, 1], [], []>} : vector<32x32xf32>, vector<32x32xf32>, vector<32x32xf32> -> vector<32x32xf32>
    %cst_37 = arith.constant 0.000000e+00 : f32
    %107 = vector.broadcast %cst_37 : f32 to vector<32x1xf32>
    %108 = arith.cmpf ogt, %1, %107 : vector<32x1xf32>
    %109 = arith.extui %108 : vector<32x1xi1> to vector<32x1xi32>
    %110 = arith.sitofp %109 : vector<32x1xi32> to vector<32x1xf32>
    %111 = vector.broadcast %110 : vector<32x1xf32> to vector<32x32xf32>
    %112 = arith.mulf %111, %106 : vector<32x32xf32>
    %113 = vector.broadcast %2 : vector<32x1xf32> to vector<32x32xf32>
    %114 = arith.mulf %113, %112 : vector<32x32xf32>
    %115 = arith.addf %20, %114 : vector<32x32xf32>
    %c0_38 = arith.constant 0 : index
    %c0_39 = arith.constant 0 : index
    %116 = vector.load %arg6[%c0_38, %c0_39] : memref<32x128xf32, #tpu.memory_space<vmem>>, vector<32x128xf32>
    %cst_40 = arith.constant dense<0.000000e+00> : vector<32x128xf32>
    %117 = tpu.matmul %115, %116, %cst_40 {dimension_numbers = #tpu.dot_dimension_numbers<[1], [0], [0], [1], [0, 0, 1, 1], [], []>} : vector<32x32xf32>, vector<32x128xf32>, vector<32x128xf32> -> vector<32x128xf32>
    %c0_41 = arith.constant 0 : index
    %c0_42 = arith.constant 0 : index
    %118 = vector.load %arg7[%c0_41, %c0_42] : memref<1x128xf32, #tpu.memory_space<vmem>>, vector<1x128xf32>
    %119 = vector.broadcast %118 : vector<1x128xf32> to vector<32x128xf32>
    %120 = arith.addf %117, %119 : vector<32x128xf32>
    %cst_43 = arith.constant 0.000000e+00 : f32
    %121 = vector.broadcast %cst_43 : f32 to vector<32x128xf32>
    %122 = arith.cmpf oge, %120, %121 : vector<32x128xf32>
    %cst_44 = arith.constant 0.00999999977 : f32
    %123 = vector.broadcast %cst_44 : f32 to vector<32x128xf32>
    %124 = arith.mulf %123, %120 : vector<32x128xf32>
    %125 = arith.select %122, %120, %124 : vector<32x128xi1>, vector<32x128xf32>
    %c0_45 = arith.constant 0 : index
    %c0_46 = arith.constant 0 : index
    %126 = vector.load %arg8[%c0_45, %c0_46] : memref<32x128xf32, #tpu.memory_space<vmem>>, vector<32x128xf32>
    tpu.vector_store %arg8[%c0_45, %c0_46], %125 {strides = array<i32>} : memref<32x128xf32, #tpu.memory_space<vmem>>, vector<32x128xf32>,
    return
  }
}

</mosaic_0001>

<bundles_post_ra>
// kernel: tpu_custom_call.1
= control target key start
LH: loop header
LB: loop body
LE: loop exit
PB: predicated region body
PF: predicated region fallthrough
CT: control target
= control target key end

     0   :  { %13 = vsyncpa [#allocation5], 0  ;;  %s1571_s0 = inlined_call_operand.vmem [shape: s32[2], index: 0, kind: input, shape index: {}]   ;;  %s1572_s1 = inlined_call_operand.vmem [shape: f32[32,2], index: 1, kind: input, shape index: {}]   ;;  %s1573_s2 = inlined_call_operand.vmem [shape: f32[16,32], index: 2, kind: input, shape index: {}]   ;;  %s1574_s3 = inlined_call_operand.vmem [shape: f32[16,32], index: 3, kind: input, shape index: {}]   ;;  %s1575_s4 = inlined_call_operand.vmem [shape: f32[16,16], index: 4, kind: input, shape index: {}]   ;;  %s1576_s5 = inlined_call_operand.vmem [shape: f32[32,4], index: 5, kind: input, shape index: {}]   ;;  %s1577_s6 = inlined_call_operand.vmem [shape: f32[32,128], index: 6, kind: input, shape index: {}]   ;;  %s1578_s7 = inlined_call_operand.vmem [shape: f32[1,128], index: 7, kind: input, shape index: {}]   ;;  %s1579_s8 = inlined_call_operand.hbm [shape: f32[32,128], index: 8, kind: output, shape index: {}]  }
   0x1   :  { %14 = vsyncpa [#allocation4], 0  ;;  %s21_s29 = sshll.u32 %s1571_s0, 4  ;;  %s22_s29 = int_to_ptr.vmem [resolvable:$true] %s21_s29 }
   0x2   :  { %s1221_s30 = scalar_lea.vmem %s22_s29, 16  ;;  %p1226_p1 = scmp.lt.s32.totalorder %s22_s29, %s22_s29 }
   0x3   :  { %p1222_p0 = scmp.ne.s32.totalorder %s22_s29, %s1221_s30  ;;  %p1227_p2 = scmp.lt.s32.totalorder %s1221_s30, %s1221_s30 }
   0x5   :  { %p1228_p3 = por %p1227_p2, %p1226_p1 }
   0x7   :  { %p1229_p4 = pnand %p1228_p3, %p1222_p0 }
   0x9   :  { %1232 = shalt.err (!%p1229_p4)
}
   0xa   :  { %s1259_s9 = smov [#allocation3]  }
   0xb   :  { %24 = dma.vmem_to_smem %s22_s29, 16, %s1259_s9, [#allocation5]  }
   0xc   :  { %1255 = dma.done.wait [#allocation5], 16  }
   0xd   :  { %1256 = vsyncadd [#allocation5], 4294967280 }
   0xe   :  { %42 = sfence }
   0xf   :  { %v1326_v0 = vld [vmem:[%s1572_s1 + $0x10] sm:$0xff]  ;;  %v1331_v1 = vld [vmem:[%s1572_s1] sm:$0xff]  ;;  %v1260_v2 = vmov 0   ;;  %v1340_v3 = vld [vmem:[%s1572_s1 + $0x18] sm:$0xff]  ;;  %vm79_vm0 = vcmask 130048   ;;  %vm173_vm1 = vcmask 261120   ;;  %v420_v46 = vlaneseq }
  0x10   :  { %1170 = vset.pattern.permute.xlu1 %v1260_v2  ;;  %1169 = vset.pattern.permute.xlu0 %v1260_v2  ;;  %v1345_v4 = vld [vmem:[%s1572_s1 + $0x8] sm:$0xff]  ;;  %v1352_v5 = vld [vmem:[%s1575_s4] sm:$0xff]  ;;  %v171_v25 = vld [vmem:[%s1576_s5 + $0x10] sm:$0xff]  ;;  %v1261_v38 = vmov 2   ;;  %v1264_v56 = vmov -1.8e+17  }
  0x11   :  { %67 = vperm.xlu1 %1170, %v1326_v0   ;;  %53 = vperm.xlu0 %1169, %v1331_v1   ;;  %v169_v6 = vld [vmem:[%s1576_s5] sm:$0xff]  ;;  %v170_v7 = vld [vmem:[%s1576_s5 + $0x8] sm:$0xff]  ;;  %v172_v26 = vld [vmem:[%s1576_s5 + $0x18] sm:$0xff]  ;;  %s1263_s5 = smov 125   ;;  %v421_v48 = vshrl.u32 %v420_v46, 7  ;;  %vm417_vm3 = vcmp.gt.f32.partialorder %v1352_v5, 0.0 }
  0x12   :  { %1079 = vmatprep.mubr.msk.f32.mxu0 %vm79_vm0, %v1352_v5  ;;  %v1128_v8 = vpack.c.bf16 %v170_v7, %v169_v6  ;;  %v63_v9 = vld [vmem:[%s1574_s3] sm:$0xff]  ;;  %v64_v13 = vld [vmem:[%s1574_s3 + $0x8] sm:$0xff]  ;;  %v1132_v27 = vpack.c.bf16 %v172_v26, %v171_v25  ;;  %s1265_s12 = smov 16   ;;  %s550_s0 = sld [smem:[#allocation3]] }
  0x13   :  { %v49_v11 = vld [vmem:[%s1573_s2] sm:$0xff]  ;;  %v50_v14 = vld [vmem:[%s1573_s2 + $0x8] sm:$0xff]  ;;  %v1424_v50 = vsub.s32 0, %v421_v48  ;;  %s1033_s13 = sld [smem:[#allocation3 + $0x1]] }
  0x14   :  { %1129 = vmatprep.subr.bf16.mxu1 %v1128_v8  ;;  %v1377_v24 = vld [vmem:[%s1575_s4 + $0x8] sm:$0xff]  ;;  %s1262_s4 = smov 127  }
  0x15   :  { %72 = vperm.xlu1 %1170, %v1340_v3   ;;  %58 = vperm.xlu0 %1169, %v1345_v4   ;;  %vm418_vm5 = vcmp.gt.f32.partialorder %v1377_v24, 0.0 }
  0x16   :  { %1131 = vmatpush3.bf16.msra.mxu1 %v1128_v8 }
  0x17   :  { %1133 = vmatprep.subr.bf16.mxu1 %v1132_v27 }
  0x18   :  { %p551_p5 = scmp.gt.s32.totalorder %s550_s0, 0 }
  0x19   :  { %1171 = vset.pattern.permute.xlu1 %v1261_v38  ;;  %p553_p6 = scmp.gt.s32.totalorder %s1033_s13, 0 }
  0x1a   :  { %1135 = vmatpush3.bf16.msra.mxu1 %v1132_v27 }
  0x1b   :  { %p1476_p7 = pnand %p553_p6, %p551_p5 }
  0x1c   :  { %s1266_s15 = smov (!%p1476_p7), 127   ;;  %s1267_s16 = smov (!%p1476_p7), 125  }
  0x1d   :  { %s1268_s17 = smov (!%p1476_p7), 16  }
  0x90   :  { %v68_v10 = vpop.permute.xlu1 %67  ;;  %v54_v12 = vpop.permute.xlu0 %53 }
  0x91   :  { %v75_v15 = vmul.f32 %v68_v10, %v63_v9  ;;  %v61_v16 = vmul.f32 %v54_v12, %v49_v11 }
  0x93   :  { %v77_v21 = vadd.f32 %v75_v15, %v61_v16 }
  0x94   :  { %v73_v17 = vpop.permute.xlu1 %72  ;;  %v59_v18 = vpop.permute.xlu0 %58 }
  0x95   :  { %v76_v19 = vmul.f32 %v73_v17, %v64_v13  ;;  %v62_v20 = vmul.f32 %v59_v18, %v50_v14 }
  0x97   :  { %v78_v22 = vadd.f32 %v76_v19, %v62_v20 }
  0x99   :  { %v1124_v23 = vpack.c.bf16 %v78_v22, %v77_v21 }
  0x9b   :  { %1125 = vmatprep.subr.bf16.mxu0 %v1124_v23 }
  0x9c   :  { %1127 = vmatpush3.bf16.msra.mxu0 %v1124_v23 }
  0x9f   :  { %1080 = vmatmul.mubr.msk.f32.vlgmr.msra.gmra.mrb[0].mxu0 %vm79_vm0, %v1377_v24 }
 0x172   :  { %v1081_v28 = vpop.f32.mrb[0].mxu0 }
 0x173   :  { %v162_v29 = vmul.f32 %v1081_v28, %v59_v18  ;;  %v152_v30 = vpop.f32.mrb[1].mxu0  ;;  %v166_v35 = vmul.f32 %v1081_v28, %v73_v17 }
 0x174   :  { %v161_v31 = vmul.f32 %v152_v30, %v54_v12  ;;  %v165_v32 = vmul.f32 %v152_v30, %v68_v10 }
 0x175   :  { %v1389_v34 = vadd.f32 %v162_v29, %v62_v20  ;;  %v1399_v37 = vadd.f32 %v166_v35, %v76_v19 }
 0x176   :  { %v1387_v33 = vadd.f32 %v161_v31, %v61_v16  ;;  %v1391_v36 = vadd.f32 %v165_v32, %v75_v15 }
 0x178   :  { %1090 = vmatprep.mubr.msk.f32.mxu1 %vm173_vm1, %v1387_v33 }
 0x179   :  { %1091 = vmatmul.mubr.msk.f32.vlgmr.msra.gmra.mrb[0].mxu1 %vm173_vm1, %v1389_v34 }
 0x17a   :  { %1093 = vmatprep.mubr.msk.f32.mxu1 %vm173_vm1, %v1391_v36 }
 0x17d   :  { %1094 = vmatmul.mubr.msk.f32.gmra.mrb[2].mxu1 %vm173_vm1, %v1399_v37 }
 0x24c   :  { %v1403_v39 = vpop.f32.mrb[0].mxu1 }
 0x24d   :  { %v1405_v40 = vpop.f32.mrb[1].mxu1 }
 0x24e   :  { %273 = vrot.lane.b32.xlu1 %v1405_v40, %s1262_s4 }
 0x250   :  { %v1408_v41 = vpop.f32.mrb[2].mxu1 }
 0x251   :  { %v1410_v42 = vpop.f32.mrb[3].mxu1 }
 0x252   :  { %315 = vrot.lane.b32.xlu1 %v1408_v41, %s1263_s5  ;;  %313 = vrot.lane.b32.xlu0 %v1410_v42, %s1263_s5 }
 0x256   :  { %500 = vperm.xlu1 %1171, %v1408_v41  }
 0x25a   :  { %1172 = vset.pattern.permute.xlu1 %v1260_v2 }
 0x25b   :  { %454 = vperm.xlu1 %1172, %v1403_v39  }
 0x270   :  { %384 = vxpose.xlu0.b32.start [1/2] (short) (narrow) %v1326_v0, 8 }
 0x274   :  { %385 = vxpose.xlu0.b32.end [2/2] (short) (narrow) %v1340_v3, 8 }
 0x29d   :  { %275 = vrot.lane.b32.xlu0 %v1403_v39, %s1262_s4 }
 0x2a1   :  { %450 = vperm.xlu0 %1169, %v1405_v40  }
 0x2a5   :  { %1173 = vset.pattern.permute.xlu0 %v1261_v38 }
 0x2a6   :  { %496 = vperm.xlu0 %1173, %v1410_v42  }
 0x2c0   :  { %v274_v43 = vpop.permute.xlu1 %273 }
 0x2c4   :  { %v314_v44 = vpop.permute.xlu0 %313  ;;  %v316_v45 = vpop.permute.xlu1 %315 }
 0x2c5   :  { %319 = vxpose.xlu1.b32.start [1/2] (short) (narrow) %v314_v44, 8 }
 0x2c9   :  { %320 = vxpose.xlu1.b32.end [2/2] (short) (narrow) %v316_v45, 8 }
 0x2d5   :  { %v1422_v49 = vpop.permute.xlu1 %500 }
 0x2da   :  { %v1427_v53 = vpop.permute.xlu1 %454 }
 0x2f0   :  { %v400_v47 = vpop.trf.xlu0 }
 0x2f1   :  { %vm416_vm2 = vcmp.gt.f32.partialorder %v400_v47, 0.0 }
 0x2f2   :  { %v434_v52 = vsel %vm416_vm2, 1, %v1260_v2  ;;  %v442_v57 = vsel %vm416_vm2, -9e+16, %v1264_v56  ;;  %vm547_vm2 = vcmask 261248  }
 0x2f3   :  { %v438_v54 = vrot.slane %v434_v52, %v1424_v50  ;;  %v446_v61 = vrot.slane %v442_v57, %v1424_v50 }
 0x2f5   :  { %vm439_vm4 = vcmp.eq.s32.totalorder %v438_v54, 1 }
 0x2f6   :  { %vm440_vm6 = vmand %vm417_vm3, %vm439_vm4 }
 0x2f7   :  { %vm441_vm7 = vmand %vm418_vm5, %vm439_vm4  ;;  %v1446_v10 = vsel %vm440_vm6, 0.0, %v446_v61 }
 0x2f8   :  { %v1444_v8 = vsel %vm441_vm7, 0.0, %v446_v61 }
 0x30f   :  { %v276_v51 = vpop.permute.xlu0 %275 }
 0x320   :  { %v1430_v55 = vpop.permute.xlu0 %450 }
 0x325   :  { %v1435_v60 = vpop.permute.xlu0 %496 }
 0x345   :  { %v335_v58 = vpop.trf.xlu1 }
 0x346   :  { %v506_v59 = vrot.slane %v335_v58, %v1424_v50 }
 0x348   :  { %v507_v62 = vadd.f32 %v506_v59, %v1435_v60  ;;  %v508_v63 = vadd.f32 %v506_v59, %v1422_v49 }
 0x34a   :  { %v511_v6 = vmul.f32 0.2, %v507_v62  ;;  %v512_v7 = vmul.f32 0.2, %v508_v63  ;;  %vm510_vm8 = vcmp.ge.f32.partialorder %v508_v63, 0.0  ;;  %vm509_vm9 = vcmp.ge.f32.partialorder %v507_v62, 0.0 }
 0x34c   :  { %v514_v9 = vsel %vm510_vm8, %v508_v63, %v512_v7  ;;  %v513_v11 = vsel %vm509_vm9, %v507_v62, %v511_v6 }
 0x34d   :  { %v516_v12 = vadd.f32 %v514_v9, %v1444_v8  ;;  %v515_v13 = vadd.f32 %v513_v11, %v1446_v10 }
 0x34f   :  { %v520_v14 = vsel %vm79_vm0, %v516_v12, -inf  ;;  %v517_v15 = vsel %vm79_vm0, %v515_v13, -inf }
 0x350   :  { %521 = vmax.xlane.f32.xlu0 %v520_v14  ;;  %518 = vmax.xlane.f32.xlu1 %v517_v15 }
 0x37d   :  { %279 = vxpose.xlu0.b32.start [1/2] (short) (narrow) %v274_v43, 8 }
 0x381   :  { %280 = vxpose.xlu0.b32.end [2/2] (short) (narrow) %v276_v51, 8 }
 0x383   :  { %351 = vxpose.xlu1.b32.start [1/2] (short) (narrow) %v1331_v1, 8 }
 0x387   :  { %352 = vxpose.xlu1.b32.end [2/2] (short) (narrow) %v1345_v4, 8 }
 0x3dd   :  { %v519_v16 = vpop.xlane.xlu1 %518  ;;  %v522_v17 = vpop.xlane.xlu0 %521 }
 0x3de   :  { %v523_v18 = vsub.f32 %v515_v13, %v519_v16  ;;  %v524_v19 = vsub.f32 %v516_v12, %v522_v17 }
 0x3e0   :  { %v525_v22 = vmul.f32 1.442695, %v523_v18  ;;  %v527_v23 = vmul.f32 1.442695, %v524_v19 }
 0x3e2   :  { %1174 = vpow2.f32 %v525_v22 }
 0x3e3   :  { %1176 = vpow2.f32 %v527_v23 }
 0x3ec   :  { %v1175_v51 = vpop.eup %1174 }
 0x3ed   :  { %v1177_v5 = vpop.eup %1176  ;;  %v529_v24 = vsel %vm79_vm0, %v1175_v51, 0.0 }
 0x3ee   :  { %v532_v54 = vsel %vm79_vm0, %v1177_v5, 0.0 }
 0x3fd   :  { %v295_v20 = vpop.trf.xlu0 }
 0x3fe   :  { %v460_v21 = vrot.slane %v295_v20, %v1424_v50 }
 0x400   :  { %v461_v25 = vadd.f32 %v460_v21, %v1430_v55  ;;  %v462_v26 = vadd.f32 %v460_v21, %v1427_v53 }
 0x402   :  { %v465_v30 = vmul.f32 0.2, %v461_v25  ;;  %v466_v32 = vmul.f32 0.2, %v462_v26  ;;  %vm463_vm11 = vcmp.ge.f32.partialorder %v461_v25, 0.0  ;;  %vm464_vm13 = vcmp.ge.f32.partialorder %v462_v26, 0.0 }
 0x403   :  { %v367_v27 = vpop.trf.xlu1 }
 0x404   :  { %vm383_vm10 = vcmp.gt.f32.partialorder %v367_v27, 0.0  ;;  %v467_v43 = vsel %vm463_vm11, %v461_v25, %v465_v30  ;;  %v468_v45 = vsel %vm464_vm13, %v462_v26, %v466_v32 }
 0x405   :  { %v419_v28 = vsel %vm383_vm10, 1, %v1260_v2  ;;  %v427_v29 = vsel %vm383_vm10, -9e+16, %v1264_v56 }
 0x406   :  { %v423_v31 = vrot.slane %v419_v28, %v1424_v50  ;;  %v431_v35 = vrot.slane %v427_v29, %v1424_v50 }
 0x408   :  { %vm424_vm12 = vcmp.eq.s32.totalorder %v423_v31, 1 }
 0x409   :  { %vm425_vm14 = vmand %vm417_vm3, %vm424_vm12 }
 0x40a   :  { %vm426_vm15 = vmand %vm418_vm5, %vm424_vm12  ;;  %v1464_v38 = vsel %vm425_vm14, 0.0, %v431_v35 }
 0x40b   :  { %v1466_v44 = vsel %vm426_vm15, 0.0, %v431_v35  ;;  %v469_v46 = vadd.f32 %v467_v43, %v1464_v38 }
 0x40c   :  { %v470_v47 = vadd.f32 %v468_v45, %v1466_v44 }
 0x40d   :  { %v471_v48 = vsel %vm79_vm0, %v469_v46, -inf }
 0x40e   :  { %v474_v52 = vsel %vm79_vm0, %v470_v47, -inf  ;;  %472 = vmax.xlane.f32.xlu0 %v471_v48 }
 0x40f   :  { %475 = vmax.xlane.f32.xlu1 %v474_v52 }
 0x412   :  { %530 = vadd.xlane.f32.xlu0 %v529_v24 }
 0x413   :  { %533 = vadd.xlane.f32.xlu1 %v532_v54 }
 0x49b   :  { %v473_v56 = vpop.xlane.xlu0 %472 }
 0x49c   :  { %v476_v57 = vpop.xlane.xlu1 %475  ;;  %v477_v58 = vsub.f32 %v469_v46, %v473_v56 }
 0x49d   :  { %v478_v59 = vsub.f32 %v470_v47, %v476_v57 }
 0x49e   :  { %v479_v61 = vmul.f32 1.442695, %v477_v58 }
 0x49f   :  { %v481_v62 = vmul.f32 1.442695, %v478_v59  ;;  %v531_v12 = vpop.xlane.xlu0 %530 }
 0x4a0   :  { %1178 = vpow2.f32 %v479_v61  ;;  %v534_v9 = vpop.xlane.xlu1 %533 }
 0x4a1   :  { %1180 = vpow2.f32 %v481_v62 }
 0x4a2   :  { %1182 = vrcp.f32 %v534_v9 }
 0x4a3   :  { %1184 = vrcp.f32 %v531_v12 }
 0x4aa   :  { %v1179_v63 = vpop.eup %1178 }
 0x4ab   :  { %v1181_v6 = vpop.eup %1180  ;;  %v483_v7 = vsel %vm79_vm0, %v1179_v63, 0.0 }
 0x4ac   :  { %v486_v11 = vsel %vm79_vm0, %v1181_v6, 0.0  ;;  %484 = vadd.xlane.f32.xlu0 %v483_v7  ;;  %v1183_v13 = vpop.eup %1182 }
 0x4ad   :  { %487 = vadd.xlane.f32.xlu1 %v486_v11  ;;  %v538_v14 = vmul.f32 %v1183_v13, %v1177_v5  ;;  %v1185_v15 = vpop.eup %1184 }
 0x4ae   :  { %v537_v16 = vmul.f32 %v1185_v15, %v1175_v51 }
 0x4be   :  { %543 = vrot.lane.b32.xlu1 %v538_v14, %s1265_s12 }
 0x4c2   :  { %541 = vrot.lane.b32.xlu0 %v537_v16, %s1265_s12  ;;  %596 = vrot.lane.b32.xlu1 (!%p1476_p7), %v1405_v40, %s1267_s16 }
 0x4c6   :  { %558 = vrot.lane.b32.xlu0 (!%p1476_p7), %v1410_v42, %s1266_s15 }
 0x4ca   :  { %560 = vrot.lane.b32.xlu0 (!%p1476_p7), %v1408_v41, %s1266_s15 }
 0x4ce   :  { %598 = vrot.lane.b32.xlu0 (!%p1476_p7), %v1403_v39, %s1267_s16 }
 0x539   :  { %v485_v17 = vpop.xlane.xlu0 %484 }
 0x53a   :  { %v488_v18 = vpop.xlane.xlu1 %487  ;;  %1186 = vrcp.f32 %v485_v17 }
 0x53b   :  { %1188 = vrcp.f32 %v488_v18 }
 0x53d   :  { %v542_v19 = vpop.permute.xlu0 %541 }
 0x53e   :  { %v544_v20 = vpop.permute.xlu1 %543  ;;  %548 = vst.msk [vmem:[#allocation2 + $0x10] sm:$0xff] %vm547_vm2, %v542_v19 }
 0x53f   :  { %549 = vst.msk [vmem:[#allocation2 + $0x18] sm:$0xff] %vm547_vm2, %v544_v20 }
 0x541   :  { %v559_v26 = vpop.permute.xlu0 (!%p1476_p7), %558 }
 0x542   :  { %557 = sbr.rel (%p1476_p7) target bundleno = 1991 (0x7c7), region = 41  ;;  %564 = vxpose.xlu1.b32.start [1/2] (short) (narrow) (!%p1476_p7), %v559_v26, 8  ;;  %v597_v28 = vpop.permute.xlu1 (!%p1476_p7), %596 }
 0x544   :  { %v1187_v21 = vpop.eup %1186 }
 0x545   :  { %v1189_v22 = vpop.eup %1188  ;;  %v491_v23 = vmul.f32 %v1187_v21, %v1179_v63  ;;  %v561_v27 = vpop.permute.xlu0 (!%p1476_p7), %560 }
 0x546   :  { %v492_v25 = vmul.f32 %v1189_v22, %v1181_v6  ;;  %565 = vxpose.xlu1.b32.end [2/2] (short) (narrow) (!%p1476_p7), %v561_v27, 8 }
 0x547   :  { %493 = vst.msk [vmem:[#allocation2] sm:$0xff] %vm79_vm0, %v491_v23 }
 0x548   :  { %494 = vst.msk [vmem:[#allocation2 + $0x8] sm:$0xff] %vm79_vm0, %v492_v25 }
 0x5c2   :  { %v580_v29 = vpop.trf.xlu1 }
 0x5c3   :  { %v637_v30 = vrot.slane %v580_v29, %v1424_v50 }
 0x5c5   :  { %v638_v31 = vadd.f32 %v637_v30, %v1430_v55  ;;  %v639_v32 = vadd.f32 %v637_v30, %v1427_v53  ;;  %v599_v55 = vpop.permute.xlu0 %598 }
 0x5c7   :  { %v642_v42 = vmul.f32 0.2, %v638_v31  ;;  %v643_v35 = vmul.f32 0.2, %v639_v32  ;;  %vm640_vm3 = vcmp.ge.f32.partialorder %v638_v31, 0.0  ;;  %vm641_vm4 = vcmp.ge.f32.partialorder %v639_v32, 0.0 }
 0x5c9   :  { %v644_v40 = vsel %vm640_vm3, %v638_v31, %v642_v42  ;;  %v645_v41 = vsel %vm641_vm4, %v639_v32, %v643_v35 }
 0x5ca   :  { %v646_v39 = vadd.f32 %v644_v40, %v1446_v10  ;;  %v647_v45 = vadd.f32 %v645_v41, %v1444_v8 }
 0x5cc   :  { %v648_v43 = vsel %vm79_vm0, %v646_v39, -inf  ;;  %v651_v46 = vsel %vm79_vm0, %v647_v45, -inf }
 0x5cd   :  { %649 = vmax.xlane.f32.xlu0 %v648_v43 }
 0x5d1   :  { %652 = vmax.xlane.f32.xlu0 %v651_v46 }
 0x5fe   :  { %602 = vxpose.xlu0.b32.start [1/2] (short) (narrow) %v597_v28, 8 }
 0x602   :  { %603 = vxpose.xlu0.b32.end [2/2] (short) (narrow) %v599_v55, 8 }
 0x65a   :  { %v650_v53 = vpop.xlane.xlu0 %649 }
 0x65b   :  { %v654_v10 = vsub.f32 %v646_v39, %v650_v53 }
 0x65d   :  { %v656_v24 = vmul.f32 1.442695, %v654_v10 }
 0x65e   :  { %v653_v47 = vpop.xlane.xlu0 %652 }
 0x65f   :  { %v655_v48 = vsub.f32 %v647_v45, %v653_v47 }
 0x661   :  { %v658_v51 = vmul.f32 1.442695, %v655_v48 }
 0x663   :  { %1190 = vpow2.f32 %v658_v51 }
 0x664   :  { %1192 = vpow2.f32 %v656_v24 }
 0x66d   :  { %v1191_v52 = vpop.eup %1190 }
 0x66e   :  { %v663_v5 = vsel %vm79_vm0, %v1191_v52, 0.0  ;;  %v1193_v9 = vpop.eup %1192 }
 0x66f   :  { %664 = vadd.xlane.f32.xlu0 %v663_v5 }
 0x67e   :  { %v618_v54 = vpop.trf.xlu0 }
 0x67f   :  { %v683_v8 = vrot.slane %v618_v54, %v1424_v50 }
 0x681   :  { %v684_v56 = vadd.f32 %v683_v8, %v1435_v60  ;;  %v685_v57 = vadd.f32 %v683_v8, %v1422_v49  ;;  %v660_v49 = vsel %vm79_vm0, %v1193_v9, 0.0 }
 0x683   :  { %v688_v58 = vmul.f32 0.2, %v684_v56  ;;  %v689_v59 = vmul.f32 0.2, %v685_v57  ;;  %vm686_vm5 = vcmp.ge.f32.partialorder %v684_v56, 0.0  ;;  %vm687_vm6 = vcmp.ge.f32.partialorder %v685_v57, 0.0 }
 0x685   :  { %v690_v61 = vsel %vm686_vm5, %v684_v56, %v688_v58  ;;  %v691_v62 = vsel %vm687_vm6, %v685_v57, %v689_v59 }
 0x686   :  { %v692_v63 = vadd.f32 %v690_v61, %v1464_v38  ;;  %v693_v7 = vadd.f32 %v691_v62, %v1466_v44 }
 0x688   :  { %v694_v6 = vsel %vm79_vm0, %v692_v63, -inf  ;;  %v697_v50 = vsel %vm79_vm0, %v693_v7, -inf }
 0x689   :  { %695 = vmax.xlane.f32.xlu1 %v694_v6 }
 0x68d   :  { %698 = vmax.xlane.f32.xlu1 %v697_v50 }
 0x691   :  { %661 = vadd.xlane.f32.xlu1 %v660_v49 }
 0x6fc   :  { %v665_v19 = vpop.xlane.xlu0 %664 }
 0x716   :  { %v696_v60 = vpop.xlane.xlu1 %695 }
 0x717   :  { %v700_v11 = vsub.f32 %v692_v63, %v696_v60 }
 0x719   :  { %v702_v12 = vmul.f32 1.442695, %v700_v11 }
 0x71a   :  { %v699_v13 = vpop.xlane.xlu1 %698 }
 0x71b   :  { %1194 = vpow2.f32 %v702_v12  ;;  %v701_v14 = vsub.f32 %v693_v7, %v699_v13 }
 0x71d   :  { %v704_v15 = vmul.f32 1.442695, %v701_v14 }
 0x71e   :  { %v662_v17 = vpop.xlane.xlu1 %661 }
 0x71f   :  { %1196 = vpow2.f32 %v704_v15 }
 0x720   :  { %1198 = vrcp.f32 %v662_v17 }
 0x721   :  { %1200 = vrcp.f32 %v665_v19 }
 0x725   :  { %v1195_v38 = vpop.eup %1194 }
 0x726   :  { %v706_v16 = vsel %vm79_vm0, %v1195_v38, 0.0 }
 0x727   :  { %707 = vadd.xlane.f32.xlu1 %v706_v16 }
 0x729   :  { %v1197_v44 = vpop.eup %1196 }
 0x72a   :  { %v709_v18 = vsel %vm79_vm0, %v1197_v44, 0.0  ;;  %v1199_v20 = vpop.eup %1198 }
 0x72b   :  { %710 = vadd.xlane.f32.xlu1 %v709_v18  ;;  %v668_v21 = vmul.f32 %v1199_v20, %v1193_v9  ;;  %v1201_v22 = vpop.eup %1200 }
 0x72c   :  { %v669_v23 = vmul.f32 %v1201_v22, %v1191_v52 }
 0x73c   :  { %672 = vrot.lane.b32.xlu1 %v668_v21, %s1268_s17 }
 0x740   :  { %674 = vrot.lane.b32.xlu1 %v669_v23, %s1268_s17 }
 0x7b4   :  { %v708_v25 = vpop.xlane.xlu1 %707 }
 0x7b5   :  { %1202 = vrcp.f32 %v708_v25 }
 0x7b8   :  { %v711_v26 = vpop.xlane.xlu1 %710 }
 0x7b9   :  { %1204 = vrcp.f32 %v711_v26 }
 0x7bc   :  { %v673_v27 = vpop.permute.xlu1 %672 }
 0x7bd   :  { %678 = vst.msk [vmem:[#allocation2] sm:$0xff] %vm547_vm2, %v673_v27 }
 0x7bf   :  { %v1203_v28 = vpop.eup %1202 }
 0x7c0   :  { %v714_v29 = vmul.f32 %v1203_v28, %v1195_v38  ;;  %v675_v30 = vpop.permute.xlu1 %674 }
 0x7c1   :  { %679 = vst.msk [vmem:[#allocation2 + $0x8] sm:$0xff] %vm547_vm2, %v675_v30 }
 0x7c2   :  { %716 = vst.msk [vmem:[#allocation2 + $0x10] sm:$0xff] %vm79_vm0, %v714_v29 }
 0x7c3   :  { %v1205_v31 = vpop.eup %1204 }
 0x7c4   :  { %v715_v32 = vmul.f32 %v1205_v31, %v1197_v44 }
 0x7c6   :  { %717 = vst.msk [vmem:[#allocation2 + $0x18] sm:$0xff] %vm79_vm0, %v715_v32 }
 0x7c7 PF:  { %720 = sbr.rel (!%p1476_p7) target bundleno = 1998 (0x7ce), region = 45  ;;  %v1269_v42 = vmov (%p1476_p7), 0.0  }
 0x7c8   :  { %721 = vst.msk [vmem:[#allocation2] sm:$0xff] (%p1476_p7), %vm547_vm2, %v1269_v42  ;;  %722 = vst.msk [vmem:[#allocation2 + $0x8] sm:$0xff] (%p1476_p7), %vm547_vm2, %v1269_v42 }
 0x7c9   :  { %723 = vst.msk [vmem:[#allocation2 + $0x10] sm:$0xff] (%p1476_p7), %vm79_vm0, %v1269_v42  ;;  %724 = vst.msk [vmem:[#allocation2 + $0x18] sm:$0xff] (%p1476_p7), %vm79_vm0, %v1269_v42 }
 0x7ce PF:  { %v1136_v35 = vpack.c.bf16 %v1389_v34, %v1387_v33  ;;  %v1140_v40 = vpack.c.bf16 %v1399_v37, %v1391_v36  ;;  %1206 = vset.pattern.permute.xlu0 %v1260_v2  ;;  %vm826_vm7 = vcmp.gt.f32.partialorder %v1331_v1, 0.0  ;;  %vm827_vm8 = vcmp.gt.f32.partialorder %v1345_v4, 0.0  ;;  %v888_v10 = vld [vmem:[%s1577_s6 + $0x10] sm:$0xff]  ;;  %s1272_s26 = smov [#allocation6]  }
 0x7cf   :  { %v725_v41 = vld [vmem:[#allocation2] sm:$0xff]  ;;  %v1270_v39 = vmov 0.0   ;;  %vm828_vm0 = vcmp.gt.f32.partialorder %v1326_v0, 0.0  ;;  %v1271_v55 = vmov 1   ;;  %vm829_vm9 = vcmp.gt.f32.partialorder %v1340_v3, 0.0  ;;  %v726_v51 = vld [vmem:[#allocation2 + $0x8] sm:$0xff] }
 0x7d0   :  { %1104 = vmatprep.mubr.msk.f32.mxu0 %vm173_vm1, %v725_v41  ;;  %v1038_v43 = vsel %vm826_vm7, 1.0, %v1270_v39  ;;  %v1039_v45 = vsel %vm827_vm8, 1.0, %v1270_v39  ;;  %1137 = vmatprep.subr.bf16.mxu0 %v1136_v35  ;;  %v1040_v53 = vsel %vm828_vm0, 1.0, %v1270_v39  ;;  %v1041_v47 = vsel %vm829_vm9, 1.0, %v1270_v39  ;;  %v727_v52 = vld [vmem:[#allocation2 + $0x10] sm:$0xff]  ;;  %v728_v5 = vld [vmem:[#allocation2 + $0x18] sm:$0xff] }
 0x7d1   :  { %v1207_v46 = vpack.i.bf16 %v1039_v45, %v1038_v43  ;;  %1213 = vset.pattern.permute.xlu1 %v1271_v55  ;;  %1139 = vmatpush3.bf16.msra.mxu0 %v1136_v35  ;;  %v1215_v48 = vpack.i.bf16 %v1041_v47, %v1040_v53  ;;  %s1015_s27 = sshll.u32 %s1272_s26, 4  ;;  %s1016_s27 = int_to_ptr.vmem [resolvable:$true] %s1015_s27 }
 0x7d2   :  { %867 = vperm.xlu1 %1213, %v1345_v4   ;;  %1141 = vmatprep.subr.bf16.mxu0 %v1140_v40  ;;  %p1238_p9 = scmp.lt.s32.totalorder %s1016_s27, %s1016_s27 }
 0x7d3   :  { %1208 = vperm.xlu0 %1206, %v1207_v46  }
 0x7d5   :  { %1143 = vmatpush3.bf16.msra.mxu0 %v1140_v40 }
 0x7d6   :  { %1214 = vset.pattern.permute.xlu1 %v1260_v2  ;;  %v886_v2 = vld [vmem:[%s1577_s6] sm:$0xff] }
 0x7d7   :  { %1212 = vset.pattern.permute.xlu0 %v1271_v55  ;;  %1216 = vperm.xlu1 %1214, %v1215_v48  }
 0x7d8   :  { %863 = vperm.xlu0 %1212, %v1331_v1   ;;  %1105 = vmatmul.mubr.msk.f32.vlgmr.msra.gmra.mrb[2].mxu0 %vm173_vm1, %v726_v51  ;;  %v887_v1 = vld [vmem:[%s1577_s6 + $0x8] sm:$0xff] }
 0x7d9   :  { %1107 = vmatprep.mubr.msk.f32.mxu0 %vm173_vm1, %v727_v52  ;;  %v1144_v4 = vpack.c.bf16 %v887_v1, %v886_v2 }
 0x7db   :  { %1220 = vset.pattern.permute.xlu1 %v1271_v55  ;;  %1145 = vmatprep.subr.bf16.mxu1 %v1144_v4 }
 0x7dc   :  { %875 = vperm.xlu0 %1212, %v1340_v3   ;;  %871 = vperm.xlu1 %1220, %v1326_v0   ;;  %v889_v0 = vld [vmem:[%s1577_s6 + $0x18] sm:$0xff] }
 0x7dd   :  { %1108 = vmatmul.mubr.msk.f32.gmra.mrb[4].mxu0 %vm173_vm1, %v728_v5  ;;  %1147 = vmatpush3.bf16.msra.mxu1 %v1144_v4  ;;  %v1148_v3 = vpack.c.bf16 %v889_v0, %v888_v10 }
 0x7df   :  { %1149 = vmatprep.subr.bf16.mxu1 %v1148_v3 }
 0x7e1   :  { %1151 = vmatpush3.bf16.msra.mxu1 %v1148_v3 }
 0x851   :  { %v868_v24 = vpop.permute.xlu1 %867 }
 0x852   :  { %v1209_v54 = vpop.permute.xlu0 %1208 }
 0x853   :  { %v1211_v8 = vunpack.i.h.bf16 %v1209_v54  ;;  %v1210_v56 = vunpack.i.l.bf16 %v1209_v54 }
 0x856   :  { %v1217_v57 = vpop.permute.xlu1 %1216 }
 0x857   :  { %v864_v58 = vpop.permute.xlu0 %863  ;;  %v1219_v63 = vunpack.i.h.bf16 %v1217_v57  ;;  %v1218_v7 = vunpack.i.l.bf16 %v1217_v57 }
 0x85b   :  { %v872_v12 = vpop.permute.xlu1 %871  ;;  %v876_v13 = vpop.permute.xlu0 %875 }
 0x8ab   :  { %v1106_v59 = vpop.f32.mrb[2].mxu0 }
 0x8ac   :  { %v859_v61 = vmul.f32 %v1211_v8, %v1106_v59  ;;  %v807_v62 = vpop.f32.mrb[3].mxu0 }
 0x8ad   :  { %v858_v6 = vmul.f32 %v1210_v56, %v807_v62 }
 0x8ae   :  { %v879_v9 = vmul.f32 %v868_v24, %v859_v61 }
 0x8af   :  { %v878_v49 = vmul.f32 %v864_v58, %v858_v6 }
 0x8b0   :  { %v1109_v50 = vpop.f32.mrb[4].mxu0  ;;  %v883_v38 = vadd.f32 %v879_v9, %v1389_v34 }
 0x8b1   :  { %v861_v60 = vmul.f32 %v1219_v63, %v1109_v50  ;;  %v817_v11 = vpop.f32.mrb[5].mxu0  ;;  %v882_v15 = vadd.f32 %v878_v49, %v1387_v33  ;;  %v1042_v33 = vld [vmem:[%s1578_s7] ss:$0 sm:$0xff]  ;;  %s1233_s7 = scalar_lea.vmem %s1016_s27, 512 }
 0x8b2   :  { %v860_v14 = vmul.f32 %v1218_v7, %v817_v11  ;;  %p1234_p8 = scmp.ne.s32.totalorder %s1016_s27, %s1233_s7  ;;  %p1239_p10 = scmp.lt.s32.totalorder %s1233_s7, %s1233_s7 }
 0x8b3   :  { %v881_v16 = vmul.f32 %v876_v13, %v861_v60  ;;  %1118 = vmatprep.mubr.msk.f32.mxu1 %vm173_vm1, %v882_v15 }
 0x8b4   :  { %v880_v44 = vmul.f32 %v872_v12, %v860_v14  ;;  %1119 = vmatmul.mubr.msk.f32.vlgmr.msra.gmra.mrb[4].mxu1 %vm173_vm1, %v883_v38  ;;  %p1240_p11 = por %p1239_p10, %p1238_p9 }
 0x8b5   :  { %v885_v18 = vadd.f32 %v881_v16, %v1399_v37 }
 0x8b6   :  { %v884_v17 = vadd.f32 %v880_v44, %v1391_v36  ;;  %p1241_p12 = pnand %p1240_p11, %p1234_p8 }
 0x8b8   :  { %1121 = vmatprep.mubr.msk.f32.mxu1 %vm173_vm1, %v884_v17 }
 0x8b9   :  { %1122 = vmatmul.mubr.msk.f32.gmra.mrb[6].mxu1 %vm173_vm1, %v885_v18 }
 0x987   :  { %v1120_v19 = vpop.f32.mrb[4].mxu1 }
 0x988   :  { %v981_v34 = vadd.f32 %v1120_v19, %v1042_v33  ;;  %v975_v20 = vpop.f32.mrb[5].mxu1 }
 0x989   :  { %v976_v21 = vadd.f32 %v1042_v33, %v975_v20 }
 0x98a   :  { %vm995_vm10 = vcmp.ge.f32.partialorder %v981_v34, 0.0  ;;  %v999_v22 = vmul.f32 0.01, %v981_v34 }
 0x98b   :  { %vm994_vm11 = vcmp.ge.f32.partialorder %v976_v21, 0.0  ;;  %v998_v23 = vmul.f32 0.01, %v976_v21 }
 0x98c   :  { %v1123_v25 = vpop.f32.mrb[6].mxu1  ;;  %v1003_v36 = vsel %vm995_vm10, %v981_v34, %v999_v22 }
 0x98d   :  { %v991_v26 = vadd.f32 %v1123_v25, %v1042_v33  ;;  %v985_v37 = vpop.f32.mrb[7].mxu1  ;;  %1007 = vst [vmem:[#allocation6 + $0x8] sm:$0xff] %v1003_v36  ;;  %v1002_v27 = vsel %vm994_vm11, %v976_v21, %v998_v23 }
 0x98e   :  { %v986_v28 = vadd.f32 %v1042_v33, %v985_v37  ;;  %1006 = vst [vmem:[#allocation6] sm:$0xff] %v1002_v27 }
 0x98f   :  { %vm997_vm1 = vcmp.ge.f32.partialorder %v991_v26, 0.0  ;;  %v1001_v29 = vmul.f32 0.01, %v991_v26 }
 0x990   :  { %vm996_vm12 = vcmp.ge.f32.partialorder %v986_v28, 0.0  ;;  %v1000_v30 = vmul.f32 0.01, %v986_v28 }
 0x991   :  { %v1005_v31 = vsel %vm997_vm1, %v991_v26, %v1001_v29 }
 0x992   :  { %1009 = vst [vmem:[#allocation6 + $0x18] sm:$0xff] %v1005_v31  ;;  %v1004_v32 = vsel %vm996_vm12, %v986_v28, %v1000_v30 }
 0x993   :  { %1008 = vst [vmem:[#allocation6 + $0x10] sm:$0xff] %v1004_v32 }
 0x994   :  { %1244 = shalt.err (!%p1241_p12)
}
 0x995   :  { %s1245_s30 = scalar_lea.hbm %s1579_s8, 512 }
 0x996   :  { %p1246_p13 = scmp.ne.s32.totalorder %s1579_s8, %s1245_s30  ;;  %p1249_p0 = scmp.lt.u32.totalorder %s1245_s30, %s1579_s8 }
 0x998   :  { %p1251_p1 = pnand %p1249_p0, %p1246_p13 }
 0x99a   :  { %1254 = shalt.err (!%p1251_p1)
}
 0x99b   :  { %s1273_s11 = smov 128   ;;  %s1274_s4 = smov 8  }
 0x99c   :  { %1021 = dma.vmem_to_hbm [thread:$0]  %s1016_s27, 512, %s1579_s8, [#allocation4], %s1273_s11, %s1273_s11, %s1274_s4  }
 0x99d   :  { %1257 = dma.done.wait [#allocation4], 512  }
 0x99e   :  { %1258 = vsyncadd [#allocation4], 4294966784 }
 0x99f   :  { %1025 = vsyncpa [#allocation4], 1 }
 0x9a0   :  { %1026 = vsyncpa [#allocation5], 1 }

</bundles_post_ra>
